<compile_context>
chip_gen: v7x
topology: tpu7x:2x2x1
jax: 0.10.0
libtpu: 0.0.40
codegen_flags: <defaults>
</compile_context>

<pallas_src>
import functools

import jax
import jax.numpy as jnp
from jax.experimental import pallas as pl
from jax.experimental.pallas import tpu as pltpu


_VMEM_LIMIT_BYTES = 48 * 1024 * 1024  # fits v7x 64 MiB phys; > v5e/v6e defaults


def _round_up(x: int, m: int) -> int:
    return ((x + m - 1) // m) * m


def _pad2d(a, rows: int, cols: int):
    pr, pc = rows - a.shape[0], cols - a.shape[1]
    if pr or pc:
        a = jnp.pad(a, ((0, pr), (0, pc)))
    return a


def _plan_nk(d_in: int, d_out: int, itemsize: int):
    """B-independent tiling plan for the N (output) and K (reduction) dims."""
    tn = min(512, _round_up(d_out, 128))       # >=256/512 when D_out allows (v6e/v7x MXU)
    n_p = _round_up(d_out, tn)
    k_r = _round_up(d_in, 128)
    # Collapse the K grid axis when the whole contraction fits one tile.
    max_single_k = 4096 if itemsize <= 2 else 2048
    if k_r <= max_single_k:
        return tn, n_p, k_r, k_r, True
    tk = 2048 if itemsize <= 2 else 1024
    return tn, n_p, tk, _round_up(k_r, tk), False


def _linear_kernel_single_k(x_ref, w_ref, b_ref, o_ref):
    # One MXU dot + bias per output tile; no accumulator, no branches.
    acc = jnp.dot(x_ref[...], w_ref[...], preferred_element_type=jnp.float32)
    o_ref[...] = (acc + b_ref[...]).astype(o_ref.dtype)


def _linear_kernel_multi_k(x_ref, w_ref, b_ref, o_ref, acc_ref):
    k = pl.program_id(2)

    @pl.when(k == 0)
    def _():
        acc_ref[...] = jnp.zeros_like(acc_ref)

    acc_ref[...] += jnp.dot(
        x_ref[...], w_ref[...], preferred_element_type=jnp.float32
    )

    @pl.when(k == pl.num_programs(2) - 1)
    def _():
        o_ref[...] = (acc_ref[...] + b_ref[...]).astype(o_ref.dtype)


@functools.partial(jax.jit, static_argnames=("d_out", "tn", "tk", "single_k"))
def _linear_fwd(x, w_p, b_p, *, d_out, tn, tk, single_k):
    B = x.shape[0]
    K_p, N_p = w_p.shape
    out_dtype = x.dtype
    compute_dtype = w_p.dtype

    # M tile: 8-aligned, capped at 512 (keeps double-buffered footprint small).
    tm = _round_up(B, 8) if B <= 512 else 512
    B_p = _round_up(B, tm)

    # Zero padding along M/K is exact for matmul+bias.
    x_p = _pad2d(x.astype(compute_dtype), B_p, K_p)

    grid_n, grid_m, grid_k = N_p // tn, B_p // tm, K_p // tk
    total_steps = grid_n * grid_m * (1 if single_k else grid_k)

    # Triple-buffer the weight stream when the grid is long enough to benefit.
    w_pipe = {"pipeline_mode": pl.Buffered(3)} if total_steps >= 3 else {}

    if single_k:
        kernel = _linear_kernel_single_k
        grid = (grid_n, grid_m)  # N leading -> W partitioned across v7x TCs
        in_specs = [
            pl.BlockSpec((tm, K_p), lambda j, i: (i, 0)),             # x
            pl.BlockSpec((K_p, tn), lambda j, i: (0, j), **w_pipe),   # W^T
            pl.BlockSpec((1, tn), lambda j, i: (0, j)),               # bias (f32)
        ]
        out_specs = pl.BlockSpec((tm, tn), lambda j, i: (i, j))
        scratch_shapes = []
        dims = ("parallel", "parallel")
    else:
        kernel = _linear_kernel_multi_k
        grid = (grid_n, grid_m, grid_k)  # K (reduction) last
        in_specs = [
            pl.BlockSpec((tm, tk), lambda j, i, k: (i, k)),           # x
            pl.BlockSpec((tk, tn), lambda j, i, k: (k, j), **w_pipe), # W^T
            pl.BlockSpec((1, tn), lambda j, i, k: (0, j)),            # bias (f32)
        ]
        out_specs = pl.BlockSpec((tm, tn), lambda j, i, k: (i, j))
        scratch_shapes = [pltpu.VMEM((tm, tn), jnp.float32)]
        dims = ("parallel", "parallel", "arbitrary")

    itemsize = jnp.dtype(compute_dtype).itemsize
    w_reads = 1 if single_k else grid_m
    cost = pl.CostEstimate(
        flops=2 * B_p * K_p * N_p,
        transcendentals=0,
        bytes_accessed=int(
            B_p * K_p * itemsize * grid_n          # x re-read per N tile
            + K_p * N_p * itemsize * w_reads       # weight stream
            + N_p * 4                              # bias
            + B_p * N_p * jnp.dtype(out_dtype).itemsize
        ),
    )

    y_p = pl.pallas_call(
        kernel,
        out_shape=jax.ShapeDtypeStruct((B_p, N_p), out_dtype),
        grid_spec=pltpu.PrefetchScalarGridSpec(
            num_scalar_prefetch=0,
            grid=grid,
            in_specs=in_specs,
            out_specs=out_specs,
            scratch_shapes=scratch_shapes,
        ),
        compiler_params=pltpu.CompilerParams(
            dimension_semantics=dims,
            vmem_limit_bytes=_VMEM_LIMIT_BYTES,
        ),
        cost_estimate=cost,
    )(x_p, w_p, b_p)

    return y_p[:B, :d_out]


def make_linear(weight, bias, *, compute_dtype=jnp.bfloat16):
    """Build forward(x) = x @ weight.T + bias (torch nn.Linear semantics).

    weight: (D_out, D_in) torch layout.  bias: (D_out,).
    The weight is transposed, cast to `compute_dtype` (bf16 default; pass
    jnp.float8_e4m3fn on v7x if accuracy permits) and zero-padded ONCE here,
    outside the jitted hot path.  Accumulation is always f32; the output is
    returned in x.dtype.
    """
    weight = jnp.asarray(weight)
    bias = jnp.asarray(bias)
    d_out, d_in = weight.shape
    itemsize = jnp.dtype(compute_dtype).itemsize
    tn, n_p, tk, k_p, single_k = _plan_nk(d_in, d_out, itemsize)

    w_p = _pad2d(weight.T.astype(compute_dtype), k_p, n_p)          # (K_p, N_p)
    b_p = _pad2d(bias.astype(jnp.float32).reshape(1, d_out), 1, n_p)  # (1, N_p) f32

    def forward(x):
        return _linear_fwd(
            x, w_p, b_p, d_out=d_out, tn=tn, tk=tk, single_k=single_k
        )

    return forward


if __name__ == "__main__":
    # Small shapes consistent with nn.Linear(input_dim, output_dim).
    batch, input_dim, output_dim = 8, 32, 16

    key = jax.random.PRNGKey(0)
    kx, kw, kb = jax.random.split(key, 3)

    # Parameter init mimicking nn.Linear defaults: U(-1/sqrt(in), 1/sqrt(in)).
    bound = 1.0 / (input_dim ** 0.5)
    weight = jax.random.uniform(
        kw, (output_dim, input_dim), jnp.float32, -bound, bound
    )  # torch layout (out, in)
    bias = jax.random.uniform(kb, (output_dim,), jnp.float32, -bound, bound)
    x = jax.random.normal(kx, (batch, input_dim), jnp.float32)

    forward = make_linear(weight, bias)  # bf16 MXU operands, f32 accumulation
    y = jax.block_until_ready(forward(x))

    # Reference check against plain JAX (same semantics as torch x @ W^T + b).
    y_ref = x @ weight.T + bias
    assert y.shape == (batch, output_dim)
    assert y.dtype == x.dtype
    # bf16 operands -> looser tolerance than pure f32.
    assert jnp.allclose(y, y_ref, atol=2e-2, rtol=2e-2), "mismatch vs reference"

    print("KERNEL_OK")
</pallas_src>

<mosaic_0001>
module attributes {stable_mosaic.version = 11 : i64} {
  func.func @_linear_kernel_single_k(%arg0: i32, %arg1: i32, %arg2: memref<8x128xbf16, #tpu.memory_space<vmem>>, %arg3: memref<128x128xbf16, #tpu.memory_space<vmem>>, %arg4: memref<1x128xf32, #tpu.memory_space<vmem>>, %arg5: memref<8x128xf32, #tpu.memory_space<vmem>>) attributes {dimension_semantics = [#tpu.dimension_semantics<parallel>, #tpu.dimension_semantics<parallel>], iteration_bounds = array<i64: 1, 1>, scalar_prefetch = 0 : i64, scratch_operands = 0 : i64, tpu.core_type = #tpu.core_type<tc>, window_params = [{transform_indices = @transform_0, window_bounds = array<i64: 8, 128>}, {transform_indices = @transform_1, window_bounds = array<i64: 128, 128>}, {transform_indices = @transform_2, window_bounds = array<i64: 1, 128>}, {transform_indices = @transform_3, window_bounds = array<i64: 8, 128>}]} {
    %c0 = arith.constant 0 : index
    %c0_0 = arith.constant 0 : index
    %0 = vector.load %arg2[%c0, %c0_0] : memref<8x128xbf16, #tpu.memory_space<vmem>>, vector<8x128xbf16>
    %c0_1 = arith.constant 0 : index
    %c0_2 = arith.constant 0 : index
    %1 = vector.load %arg3[%c0_1, %c0_2] : memref<128x128xbf16, #tpu.memory_space<vmem>>, vector<128x128xbf16>
    %cst = arith.constant dense<0.000000e+00> : vector<8x128xf32>
    %2 = tpu.matmul %0, %1, %cst {dimension_numbers = #tpu.dot_dimension_numbers<[1], [0], [0], [1], [0, 0, 1, 1], [], []>} : vector<8x128xbf16>, vector<128x128xbf16>, vector<8x128xf32> -> vector<8x128xf32>
    %c0_3 = arith.constant 0 : index
    %c0_4 = arith.constant 0 : index
    %3 = vector.load %arg4[%c0_3, %c0_4] : memref<1x128xf32, #tpu.memory_space<vmem>>, vector<1x128xf32>
    %4 = vector.broadcast %3 : vector<1x128xf32> to vector<8x128xf32>
    %5 = arith.addf %2, %4 : vector<8x128xf32>
    %c0_5 = arith.constant 0 : index
    %c0_6 = arith.constant 0 : index
    %6 = vector.load %arg5[%c0_5, %c0_6] : memref<8x128xf32, #tpu.memory_space<vmem>>, vector<8x128xf32>
    tpu.vector_store %arg5[%c0_5, %c0_6], %5 {strides = array<i32>} : memref<8x128xf32, #tpu.memory_space<vmem>>, vector<8x128xf32>,
    return
  }
  func.func @transform_0(%arg0: i32, %arg1: i32) -> (i32, i32) {
    %c0_i32 = arith.constant 0 : i32
    %c0_i32_0 = arith.constant 0 : i32
    return %arg1, %c0_i32 : i32, i32
  }
  func.func @transform_1(%arg0: i32, %arg1: i32) -> (i32, i32) {
    %c0_i32 = arith.constant 0 : i32
    %c0_i32_0 = arith.constant 0 : i32
    return %c0_i32, %arg0 : i32, i32
  }
  func.func @transform_2(%arg0: i32, %arg1: i32) -> (i32, i32) {
    %c0_i32 = arith.constant 0 : i32
    %c0_i32_0 = arith.constant 0 : i32
    return %c0_i32, %arg0 : i32, i32
  }
  func.func @transform_3(%arg0: i32, %arg1: i32) -> (i32, i32) {
    %c0_i32 = arith.constant 0 : i32
    return %arg1, %arg0 : i32, i32
  }
}

</mosaic_0001>

<bundles_post_ra>
// kernel: _linear_fwd.1
= control target key start
LH: loop header
LB: loop body
LE: loop exit
PB: predicated region body
PF: predicated region fallthrough
CT: control target
= control target key end

     0   :  { %8 = vsyncpa [#allocation3], 0  ;;  %s314_s0 = inlined_call_operand.vmem [shape: bf16[8,128], index: 0, kind: input, shape index: {}]   ;;  %s315_s1 = inlined_call_operand.hbm [shape: bf16[128,128], index: 1, kind: input, shape index: {}]   ;;  %s316_s2 = inlined_call_operand.vmem [shape: f32[1,128], index: 2, kind: input, shape index: {}]   ;;  %s317_s3 = inlined_call_operand.hbm [shape: f32[8,128], index: 3, kind: output, shape index: {}]  }
   0x1   :  { %9 = vsyncpa [#allocation4], 0  ;;  %s258_s12 = smov [#allocation2]   ;;  %s210_s16 = scalar_lea.hbm %s315_s1, 1024 }
   0x2   :  { %s17_s13 = sshll.u32 %s258_s12, 4  ;;  %p211_p0 = scmp.ne.s32.totalorder %s315_s1, %s210_s16  ;;  %s18_s13 = int_to_ptr.vmem [resolvable:$true] %s17_s13 }
   0x3   :  { %p214_p1 = scmp.lt.u32.totalorder %s210_s16, %s315_s1 }
   0x5   :  { %p216_p2 = pnand %p214_p1, %p211_p0 }
   0x7   :  { %219 = shalt.err (!%p216_p2)
}
   0x8   :  { %s220_s21 = scalar_lea.vmem %s18_s13, 1024  ;;  %p225_p4 = scmp.lt.s32.totalorder %s18_s13, %s18_s13 }
   0x9   :  { %p221_p3 = scmp.ne.s32.totalorder %s18_s13, %s220_s21  ;;  %p226_p5 = scmp.lt.s32.totalorder %s220_s21, %s220_s21 }
   0xb   :  { %p227_p6 = por %p226_p5, %p225_p4 }
   0xd   :  { %p228_p7 = pnand %p227_p6, %p221_p3 }
   0xf   :  { %231 = shalt.err (!%p228_p7)
}
  0x10   :  { %s259_s22 = smov 64   ;;  %s260_s23 = smov 4  }
  0x11   :  { %23 = dma.hbm_to_vmem [thread:$0]  %s315_s1, 1024, %s18_s13, [#allocation3], %s259_s22, %s259_s22, %s260_s23  }
  0x12   :  { %254 = dma.done.wait [#allocation3], 1024  }
  0x13   :  { %255 = vsyncadd [#allocation3], 4294966272  ;;  %v261_v0 = vmov 0.0   ;;  %vm262_vm0 = vmmov 0   ;;  %v202_v1 = vld [vmem:[#allocation2] sm:$0xff]   ;;  %v203_v2 = vld [vmem:[#allocation2 + $0x8] sm:$0xff]  }
  0x14   :  { %176 = vmatprep.subr.bf16.mxu0 %v261_v0  ;;  %192 = vmatprep.mubr.msk.bf16.mxu0 %vm262_vm0, %v261_v0  ;;  %v204_v3 = vld [vmem:[#allocation2 + $0x10] sm:$0xff]   ;;  %v205_v4 = vld [vmem:[#allocation2 + $0x18] sm:$0xff]   ;;  %v206_v5 = vld [vmem:[#allocation2 + $0x20] sm:$0xff]   ;;  %s263_s29 = smov [#allocation5]  }
  0x15   :  { %177 = vmatpush3.bf16.msra.mxu0 %v202_v1  ;;  %v207_v6 = vld [vmem:[#allocation2 + $0x28] sm:$0xff]   ;;  %v208_v7 = vld [vmem:[#allocation2 + $0x30] sm:$0xff]   ;;  %v209_v8 = vld [vmem:[#allocation2 + $0x38] sm:$0xff]   ;;  %s149_s30 = sshll.u32 %s263_s29, 4  ;;  %s150_s30 = int_to_ptr.vmem [resolvable:$true] %s149_s30 }
  0x16   :  { %178 = vmatprep.subr.bf16.mxu0 %v261_v0  ;;  %v30_v9 = vld [vmem:[%s314_s0] sm:$0xf]  ;;  %s232_s4 = scalar_lea.vmem %s150_s30, 128  ;;  %p237_p9 = scmp.lt.s32.totalorder %s150_s30, %s150_s30 }
  0x17   :  { %v158_v10 = vld [vmem:[%s316_s2] ss:$0 sm:$0xff]  ;;  %p233_p8 = scmp.ne.s32.totalorder %s150_s30, %s232_s4  ;;  %p238_p10 = scmp.lt.s32.totalorder %s232_s4, %s232_s4 }
  0x19   :  { %179 = vmatpush3.bf16.msra.mxu0 %v203_v2  ;;  %p239_p11 = por %p238_p10, %p237_p9 }
  0x1a   :  { %180 = vmatprep.subr.bf16.mxu0 %v261_v0 }
  0x1b   :  { %p240_p12 = pnand %p239_p11, %p233_p8 }
  0x1d   :  { %181 = vmatpush3.bf16.msra.mxu0 %v204_v3 }
  0x1e   :  { %182 = vmatprep.subr.bf16.mxu0 %v261_v0 }
  0x21   :  { %183 = vmatpush3.bf16.msra.mxu0 %v205_v4 }
  0x22   :  { %184 = vmatprep.subr.bf16.mxu0 %v261_v0 }
  0x25   :  { %185 = vmatpush3.bf16.msra.mxu0 %v206_v5 }
  0x26   :  { %186 = vmatprep.subr.bf16.mxu0 %v261_v0 }
  0x29   :  { %187 = vmatpush3.bf16.msra.mxu0 %v207_v6 }
  0x2a   :  { %188 = vmatprep.subr.bf16.mxu0 %v261_v0 }
  0x2d   :  { %189 = vmatpush3.bf16.msra.mxu0 %v208_v7 }
  0x2e   :  { %190 = vmatprep.subr.bf16.mxu0 %v261_v0 }
  0x31   :  { %191 = vmatpush3.bf16.msra.mxu0 %v209_v8 }
  0x34   :  { %193 = vmatmul.mubr.bf16.vlgmr.msra.gmra.mrb[0].mxu0 %v30_v9 }
 0x107   :  { %v136_v11 = vpop.f32.mrb[0].mxu0 }
 0x108   :  { %v137_v12 = vadd.f32 %v158_v10, %v136_v11  ;;  %v194_v13 = vpop.f32.mrb[1].mxu0 }
 0x109   :  { %v139_v14 = vpop.f32.mrb[2].mxu0 }
 0x10a   :  { %142 = vst [vmem:[#allocation5] sm:$0xff] %v137_v12  ;;  %v195_v15 = vpop.f32.mrb[3].mxu0 }
 0x10b   :  { %243 = shalt.err (!%p240_p12)
}
 0x10c   :  { %s244_s2 = scalar_lea.hbm %s317_s3, 128 }
 0x10d   :  { %p245_p13 = scmp.ne.s32.totalorder %s317_s3, %s244_s2  ;;  %p248_p0 = scmp.lt.u32.totalorder %s244_s2, %s317_s3 }
 0x10f   :  { %p250_p1 = pnand %p248_p0, %p245_p13 }
 0x111   :  { %253 = shalt.err (!%p250_p1)
}
 0x112   :  { %152 = dma.vmem_to_hbm [thread:$0]  %s150_s30, 128, %s317_s3, [#allocation4]  }
 0x113   :  { %256 = dma.done.wait [#allocation4], 128  }
 0x114   :  { %257 = vsyncadd [#allocation4], 4294967168 }
 0x115   :  { %156 = vsyncpa [#allocation3], 1 }
 0x116   :  { %157 = vsyncpa [#allocation4], 1 }

</bundles_post_ra>
